<compile_context>
chip_gen: v7x
topology: tpu7x:2x2x1
jax: 0.10.0
libtpu: 0.0.40
codegen_flags: <defaults>
</compile_context>

<pallas_src>
import jax
import jax.numpy as jnp
from jax.experimental import pallas as pl
from jax.experimental.pallas import tpu as pltpu

INPUT_DIM = 256
H1 = 128
H2 = 64


def _round_up(n, m):
    return ((n + m - 1) // m) * m


def _mlp_kernel(x_ref, w1_ref, b1_ref, w2_ref, b2_ref,
                w3_ref, b3_ref, w4_ref, b4_ref, out_ref):
    # x arrives as f32 straight from HBM; bf16 cast here is free (hidden under DMA).
    x = x_ref[...].astype(jnp.bfloat16)
    # encoder: Linear(256,128) + ReLU   (Dropout(0.2) = identity at inference)
    h = jnp.dot(x, w1_ref[...], preferred_element_type=jnp.float32)
    h = jnp.maximum(h + b1_ref[...], 0.0).astype(jnp.bfloat16)
    # encoder: Linear(128,64) + ReLU
    h = jnp.dot(h, w2_ref[...], preferred_element_type=jnp.float32)
    h = jnp.maximum(h + b2_ref[...], 0.0).astype(jnp.bfloat16)
    # decoder: Linear(64,128) + ReLU
    h = jnp.dot(h, w3_ref[...], preferred_element_type=jnp.float32)
    h = jnp.maximum(h + b3_ref[...], 0.0).astype(jnp.bfloat16)
    # decoder: Linear(128,256) (no activation)
    y = jnp.dot(h, w4_ref[...], preferred_element_type=jnp.float32)
    out_ref[...] = (y + b4_ref[...]).astype(out_ref.dtype)


def _const_spec(shape):
    """BlockSpec for a grid-invariant operand (weights / biases).

    Constant index_map => the tile is DMA'd once; Buffered(1) drops the
    needless second buffer (more VMEM headroom for the batch tile).
    """
    try:
        return pl.BlockSpec(shape, lambda i: (0, 0),
                            pipeline_mode=pl.Buffered(1))
    except (TypeError, AttributeError):   # fallback: default double-buffering
        return pl.BlockSpec(shape, lambda i: (0, 0))


def simplified_neural_model(x, params, *, block_b=2048):
    """x: [B, INPUT_DIM] float32. params: dict of W/b arrays. Returns [B, INPUT_DIM]."""
    B, D = x.shape
    assert D == INPUT_DIM
    out_dtype = x.dtype

    # ---- batch tile selection (no wrapper-side padding) --------------------
    # f32 input only needs 8-sublane alignment; Pallas masks the boundary
    # block when B % bb != 0 (rows are independent, so this is safe).
    bb = _round_up(min(block_b, _round_up(B, 8)), 8)
    # Keep >= 4 grid steps (>= 2 per TensorCore on v7x with 'parallel') so
    # double-buffering can actually hide the DMA behind compute.
    while pl.cdiv(B, bb) < 4 and bb > 8:
        bb = _round_up(max(bb // 2, 8), 8)
    grid = (pl.cdiv(B, bb),)

    # ---- operands: x stays f32; weights bf16 (f32 accumulation on the MXU) -
    w1 = params["w1"].astype(jnp.bfloat16); b1 = params["b1"].astype(jnp.float32)
    w2 = params["w2"].astype(jnp.bfloat16); b2 = params["b2"].astype(jnp.float32)
    w3 = params["w3"].astype(jnp.bfloat16); b3 = params["b3"].astype(jnp.float32)
    w4 = params["w4"].astype(jnp.bfloat16); b4 = params["b4"].astype(jnp.float32)

    # ---- scoped-VMEM limit: never below any generation's default -----------
    weight_bytes = 2 * (D * H1 + H1 * H2 + H2 * H1 + H1 * D) + 4 * (H1 + H2 + H1 + D)
    io_bytes = 2 * bb * D * 4 * 2                     # double-buffered f32 in + f32 out
    inter_bytes = bb * (H1 + H2 + H1) * (4 + 2)       # f32 + bf16 activation copies
    inter_bytes += bb * D * 4                          # f32 y before bias/cast
    est = weight_bytes + io_bytes + inter_bytes + (4 << 20)   # + compiler scratch slack
    vmem_limit = max(int(est * 1.25), 32 << 20)       # >= v5e/v6e/v7x scoped defaults

    out = pl.pallas_call(
        _mlp_kernel,
        out_shape=jax.ShapeDtypeStruct((B, D), out_dtype),
        grid_spec=pltpu.PrefetchScalarGridSpec(
            num_scalar_prefetch=0,
            grid=grid,
            in_specs=[
                pl.BlockSpec((bb, D), lambda i: (i, 0)),        # x tile (f32)
                _const_spec((D, H1)),  _const_spec((1, H1)),    # W1, b1
                _const_spec((H1, H2)), _const_spec((1, H2)),    # W2, b2
                _const_spec((H2, H1)), _const_spec((1, H1)),    # W3, b3
                _const_spec((H1, D)),  _const_spec((1, D)),     # W4, b4
            ],
            out_specs=pl.BlockSpec((bb, D), lambda i: (i, 0)),
        ),
        compiler_params=pltpu.CompilerParams(
            dimension_semantics=("parallel",),
            vmem_limit_bytes=vmem_limit),
    )(x, w1, b1, w2, b2, w3, b3, w4, b4)

    return out


def init_params(key):
    """Deterministic init mimicking PyTorch nn.Linear default:
    U(-1/sqrt(fan_in), 1/sqrt(fan_in)) for both weights and biases."""
    dims = [(INPUT_DIM, H1), (H1, H2), (H2, H1), (H1, INPUT_DIM)]
    params = {}
    for idx, (fan_in, fan_out) in enumerate(dims, start=1):
        key, kw, kb = jax.random.split(key, 3)
        bound = 1.0 / jnp.sqrt(float(fan_in))
        params[f"w{idx}"] = jax.random.uniform(
            kw, (fan_in, fan_out), jnp.float32, -bound, bound)
        params[f"b{idx}"] = jax.random.uniform(
            kb, (1, fan_out), jnp.float32, -bound, bound)
    return params


def _reference(x, p):
    # Mirrors the kernel's numerics: bf16 operands, f32 accumulation.
    bf = jnp.bfloat16
    h = x.astype(bf)
    h = jnp.maximum(jnp.dot(h, p["w1"].astype(bf),
                            preferred_element_type=jnp.float32) + p["b1"], 0.0).astype(bf)
    h = jnp.maximum(jnp.dot(h, p["w2"].astype(bf),
                            preferred_element_type=jnp.float32) + p["b2"], 0.0).astype(bf)
    h = jnp.maximum(jnp.dot(h, p["w3"].astype(bf),
                            preferred_element_type=jnp.float32) + p["b3"], 0.0).astype(bf)
    y = jnp.dot(h, p["w4"].astype(bf),
                preferred_element_type=jnp.float32) + p["b4"]
    return y.astype(x.dtype)


if __name__ == "__main__":
    key = jax.random.PRNGKey(0)
    key, kx = jax.random.split(key)
    # Small smoke-test batch; real benchmarking should use B >= 4096 and report
    # the min over several xprof-traced runs.
    B = 32
    x = jax.random.normal(kx, (B, INPUT_DIM), jnp.float32)
    params = init_params(key)

    out = simplified_neural_model(x, params)
    out = jax.block_until_ready(out)

    ref = _reference(x, params)
    assert out.shape == (B, INPUT_DIM)
    assert jnp.allclose(out, ref, atol=2e-2, rtol=2e-2), \
        float(jnp.max(jnp.abs(out - ref)))
    print("KERNEL_OK")
</pallas_src>

<mosaic_0001>
module attributes {stable_mosaic.version = 11 : i64} {
  func.func @_mlp_kernel(%arg0: i32, %arg1: memref<8x256xf32, #tpu.memory_space<vmem>>, %arg2: memref<256x128xbf16, #tpu.memory_space<vmem>>, %arg3: memref<1x128xf32, #tpu.memory_space<vmem>>, %arg4: memref<128x64xbf16, #tpu.memory_space<vmem>>, %arg5: memref<1x64xf32, #tpu.memory_space<vmem>>, %arg6: memref<64x128xbf16, #tpu.memory_space<vmem>>, %arg7: memref<1x128xf32, #tpu.memory_space<vmem>>, %arg8: memref<128x256xbf16, #tpu.memory_space<vmem>>, %arg9: memref<1x256xf32, #tpu.memory_space<vmem>>, %arg10: memref<8x256xf32, #tpu.memory_space<vmem>>) attributes {dimension_semantics = [#tpu.dimension_semantics<parallel>], iteration_bounds = array<i64: 4>, scalar_prefetch = 0 : i64, scratch_operands = 0 : i64, tpu.core_type = #tpu.core_type<tc>, window_params = [{transform_indices = @transform_0, window_bounds = array<i64: 8, 256>}, {pipeline_mode = #tpu.pipeline_mode<synchronous>, transform_indices = @transform_1, window_bounds = array<i64: 256, 128>}, {pipeline_mode = #tpu.pipeline_mode<synchronous>, transform_indices = @transform_2, window_bounds = array<i64: 1, 128>}, {pipeline_mode = #tpu.pipeline_mode<synchronous>, transform_indices = @transform_3, window_bounds = array<i64: 128, 64>}, {pipeline_mode = #tpu.pipeline_mode<synchronous>, transform_indices = @transform_4, window_bounds = array<i64: 1, 64>}, {pipeline_mode = #tpu.pipeline_mode<synchronous>, transform_indices = @transform_5, window_bounds = array<i64: 64, 128>}, {pipeline_mode = #tpu.pipeline_mode<synchronous>, transform_indices = @transform_6, window_bounds = array<i64: 1, 128>}, {pipeline_mode = #tpu.pipeline_mode<synchronous>, transform_indices = @transform_7, window_bounds = array<i64: 128, 256>}, {pipeline_mode = #tpu.pipeline_mode<synchronous>, transform_indices = @transform_8, window_bounds = array<i64: 1, 256>}, {transform_indices = @transform_9, window_bounds = array<i64: 8, 256>}]} {
    %c0 = arith.constant 0 : index
    %c0_0 = arith.constant 0 : index
    %0 = vector.load %arg1[%c0, %c0_0] : memref<8x256xf32, #tpu.memory_space<vmem>>, vector<8x256xf32>
    %1 = arith.truncf %0 : vector<8x256xf32> to vector<8x256xbf16>
    %c0_1 = arith.constant 0 : index
    %c0_2 = arith.constant 0 : index
    %2 = vector.load %arg2[%c0_1, %c0_2] : memref<256x128xbf16, #tpu.memory_space<vmem>>, vector<256x128xbf16>
    %cst = arith.constant dense<0.000000e+00> : vector<8x128xf32>
    %3 = tpu.matmul %1, %2, %cst {dimension_numbers = #tpu.dot_dimension_numbers<[1], [0], [0], [1], [0, 0, 1, 1], [], []>} : vector<8x256xbf16>, vector<256x128xbf16>, vector<8x128xf32> -> vector<8x128xf32>
    %c0_3 = arith.constant 0 : index
    %c0_4 = arith.constant 0 : index
    %4 = vector.load %arg3[%c0_3, %c0_4] : memref<1x128xf32, #tpu.memory_space<vmem>>, vector<1x128xf32>
    %5 = vector.broadcast %4 : vector<1x128xf32> to vector<8x128xf32>
    %6 = arith.addf %3, %5 : vector<8x128xf32>
    %cst_5 = arith.constant 0.000000e+00 : f32
    %7 = vector.broadcast %cst_5 : f32 to vector<8x128xf32>
    %8 = arith.maximumf %6, %7 : vector<8x128xf32>
    %9 = arith.truncf %8 : vector<8x128xf32> to vector<8x128xbf16>
    %c0_6 = arith.constant 0 : index
    %c0_7 = arith.constant 0 : index
    %10 = vector.load %arg4[%c0_6, %c0_7] : memref<128x64xbf16, #tpu.memory_space<vmem>>, vector<128x64xbf16>
    %cst_8 = arith.constant dense<0.000000e+00> : vector<8x64xf32>
    %11 = tpu.matmul %9, %10, %cst_8 {dimension_numbers = #tpu.dot_dimension_numbers<[1], [0], [0], [1], [0, 0, 1, 1], [], []>} : vector<8x128xbf16>, vector<128x64xbf16>, vector<8x64xf32> -> vector<8x64xf32>
    %c0_9 = arith.constant 0 : index
    %c0_10 = arith.constant 0 : index
    %12 = vector.load %arg5[%c0_9, %c0_10] : memref<1x64xf32, #tpu.memory_space<vmem>>, vector<1x64xf32>
    %13 = vector.broadcast %12 : vector<1x64xf32> to vector<8x64xf32>
    %14 = arith.addf %11, %13 : vector<8x64xf32>
    %cst_11 = arith.constant 0.000000e+00 : f32
    %15 = vector.broadcast %cst_11 : f32 to vector<8x64xf32>
    %16 = arith.maximumf %14, %15 : vector<8x64xf32>
    %17 = arith.truncf %16 : vector<8x64xf32> to vector<8x64xbf16>
    %c0_12 = arith.constant 0 : index
    %c0_13 = arith.constant 0 : index
    %18 = vector.load %arg6[%c0_12, %c0_13] : memref<64x128xbf16, #tpu.memory_space<vmem>>, vector<64x128xbf16>
    %cst_14 = arith.constant dense<0.000000e+00> : vector<8x128xf32>
    %19 = tpu.matmul %17, %18, %cst_14 {dimension_numbers = #tpu.dot_dimension_numbers<[1], [0], [0], [1], [0, 0, 1, 1], [], []>} : vector<8x64xbf16>, vector<64x128xbf16>, vector<8x128xf32> -> vector<8x128xf32>
    %c0_15 = arith.constant 0 : index
    %c0_16 = arith.constant 0 : index
    %20 = vector.load %arg7[%c0_15, %c0_16] : memref<1x128xf32, #tpu.memory_space<vmem>>, vector<1x128xf32>
    %21 = vector.broadcast %20 : vector<1x128xf32> to vector<8x128xf32>
    %22 = arith.addf %19, %21 : vector<8x128xf32>
    %cst_17 = arith.constant 0.000000e+00 : f32
    %23 = vector.broadcast %cst_17 : f32 to vector<8x128xf32>
    %24 = arith.maximumf %22, %23 : vector<8x128xf32>
    %25 = arith.truncf %24 : vector<8x128xf32> to vector<8x128xbf16>
    %c0_18 = arith.constant 0 : index
    %c0_19 = arith.constant 0 : index
    %26 = vector.load %arg8[%c0_18, %c0_19] : memref<128x256xbf16, #tpu.memory_space<vmem>>, vector<128x256xbf16>
    %cst_20 = arith.constant dense<0.000000e+00> : vector<8x256xf32>
    %27 = tpu.matmul %25, %26, %cst_20 {dimension_numbers = #tpu.dot_dimension_numbers<[1], [0], [0], [1], [0, 0, 1, 1], [], []>} : vector<8x128xbf16>, vector<128x256xbf16>, vector<8x256xf32> -> vector<8x256xf32>
    %c0_21 = arith.constant 0 : index
    %c0_22 = arith.constant 0 : index
    %28 = vector.load %arg9[%c0_21, %c0_22] : memref<1x256xf32, #tpu.memory_space<vmem>>, vector<1x256xf32>
    %29 = vector.broadcast %28 : vector<1x256xf32> to vector<8x256xf32>
    %30 = arith.addf %27, %29 : vector<8x256xf32>
    %c0_23 = arith.constant 0 : index
    %c0_24 = arith.constant 0 : index
    %31 = vector.load %arg10[%c0_23, %c0_24] : memref<8x256xf32, #tpu.memory_space<vmem>>, vector<8x256xf32>
    tpu.vector_store %arg10[%c0_23, %c0_24], %30 {strides = array<i32>} : memref<8x256xf32, #tpu.memory_space<vmem>>, vector<8x256xf32>,
    return
  }
  func.func @transform_0(%arg0: i32) -> (i32, i32) {
    %c0_i32 = arith.constant 0 : i32
    %c0_i32_0 = arith.constant 0 : i32
    return %arg0, %c0_i32 : i32, i32
  }
  func.func @transform_1(%arg0: i32) -> (i32, i32) {
    %c0_i32 = arith.constant 0 : i32
    %c0_i32_0 = arith.constant 0 : i32
    %c0_i32_1 = arith.constant 0 : i32
    return %c0_i32, %c0_i32_0 : i32, i32
  }
  func.func @transform_2(%arg0: i32) -> (i32, i32) {
    %c0_i32 = arith.constant 0 : i32
    %c0_i32_0 = arith.constant 0 : i32
    %c0_i32_1 = arith.constant 0 : i32
    return %c0_i32, %c0_i32_0 : i32, i32
  }
  func.func @transform_3(%arg0: i32) -> (i32, i32) {
    %c0_i32 = arith.constant 0 : i32
    %c0_i32_0 = arith.constant 0 : i32
    %c0_i32_1 = arith.constant 0 : i32
    return %c0_i32, %c0_i32_0 : i32, i32
  }
  func.func @transform_4(%arg0: i32) -> (i32, i32) {
    %c0_i32 = arith.constant 0 : i32
    %c0_i32_0 = arith.constant 0 : i32
    %c0_i32_1 = arith.constant 0 : i32
    return %c0_i32, %c0_i32_0 : i32, i32
  }
  func.func @transform_5(%arg0: i32) -> (i32, i32) {
    %c0_i32 = arith.constant 0 : i32
    %c0_i32_0 = arith.constant 0 : i32
    %c0_i32_1 = arith.constant 0 : i32
    return %c0_i32, %c0_i32_0 : i32, i32
  }
  func.func @transform_6(%arg0: i32) -> (i32, i32) {
    %c0_i32 = arith.constant 0 : i32
    %c0_i32_0 = arith.constant 0 : i32
    %c0_i32_1 = arith.constant 0 : i32
    return %c0_i32, %c0_i32_0 : i32, i32
  }
  func.func @transform_7(%arg0: i32) -> (i32, i32) {
    %c0_i32 = arith.constant 0 : i32
    %c0_i32_0 = arith.constant 0 : i32
    %c0_i32_1 = arith.constant 0 : i32
    return %c0_i32, %c0_i32_0 : i32, i32
  }
  func.func @transform_8(%arg0: i32) -> (i32, i32) {
    %c0_i32 = arith.constant 0 : i32
    %c0_i32_0 = arith.constant 0 : i32
    %c0_i32_1 = arith.constant 0 : i32
    return %c0_i32, %c0_i32_0 : i32, i32
  }
  func.func @transform_9(%arg0: i32) -> (i32, i32) {
    %c0_i32 = arith.constant 0 : i32
    %c0_i32_0 = arith.constant 0 : i32
    return %arg0, %c0_i32 : i32, i32
  }
}

</mosaic_0001>

<bundles_post_ra>
// kernel: tpu_custom_call.1
= control target key start
LH: loop header
LB: loop body
LE: loop exit
PB: predicated region body
PF: predicated region fallthrough
CT: control target
= control target key end

     0   :  { %14 = vsyncpa [#allocation3], 0  ;;  %s1663_s0 = inlined_call_operand.vmem [shape: f32[32,256], index: 0, kind: input, shape index: {}]   ;;  %s1664_s1 = inlined_call_operand.hbm [shape: bf16[256,128], index: 1, kind: input, shape index: {}]   ;;  %s1665_s2 = inlined_call_operand.vmem [shape: f32[1,128], index: 2, kind: input, shape index: {}]   ;;  %s1666_s3 = inlined_call_operand.vmem [shape: bf16[128,64], index: 3, kind: input, shape index: {}]   ;;  %s1667_s4 = inlined_call_operand.vmem [shape: f32[1,64], index: 4, kind: input, shape index: {}]   ;;  %s1668_s5 = inlined_call_operand.vmem [shape: bf16[64,128], index: 5, kind: input, shape index: {}]   ;;  %s1669_s6 = inlined_call_operand.vmem [shape: f32[1,128], index: 6, kind: input, shape index: {}]   ;;  %s1670_s7 = inlined_call_operand.hbm [shape: bf16[128,256], index: 7, kind: input, shape index: {}]   ;;  %s1671_s8 = inlined_call_operand.vmem [shape: f32[1,256], index: 8, kind: input, shape index: {}]   ;;  %s1672_s9 = inlined_call_operand.hbm [shape: f32[32,256], index: 9, kind: output, shape index: {}]  }
   0x1   :  { %15 = vsyncpa [#allocation6], 0 }
   0x2   :  { %16 = vsyncpa [#allocation4], 0 }
   0x3   :  { %18 = vsyncpa [#allocation4 + $0x1], 0  ;;  %s1429_s30 = smov 0   ;;  %s1431_s10 = smov 0  }
   0x4   :  { %s1433_s11 = smov 0   ;;  %s1435_s12 = smov 0  }
   0x5 LB: > { %1679 = sst [smem:[#allocation11_spill]] %s1363_s11  ;;  %s1450_s13 = sadd.s32 4294967295, %s1367_s12   ;;  %s1367_s12 = sphi %s1435_s12, %s1693_s12   ;;  %s1363_s11 = sphi %s1433_s11, %s1695_s11   ;;  %s1359_s10 = sphi %s1431_s10, %s1697_s10   ;;  %s1355_s30 = sphi %s1429_s30, %s1696_s30  }
   0x6   : > { %s988_s14 = sadd.s32 4294967294, %s1367_s12   ;;  %s1454_s15 = sadd.s32 1, %s1367_s12  }
   0x7   : > { %1680 = sst [smem:[#allocation12_spill]] %s1454_s15  ;;  %s225_s16 = sadd.s32 1, %s1363_s11 }
   0x8   : > { %s222_s17 = ssub.s32 %s1367_s12, %s1454_s15  ;;  %p235_p0 = scmp.ne.s32.totalorder %s1363_s11, %s1359_s10 }
   0x9   : > { %p223_p1 = scmp.eq.s32.totalorder %s222_s17, 0  ;;  %p236_p2 = scmp.eq.s32.totalorder %s1450_s13, 3 }
   0xa   : > { %p241_p3 = scmp.ne.s32.totalorder %s1359_s10, %s1355_s30  ;;  %p242_p4 = scmp.eq.s32.totalorder %s988_s14, 3 }
   0xb   : > { %s1465_s18 = scalar_select %p223_p1, %s1363_s11, %s225_s16  }
   0xc   : > { %p1467_p5 = por %p236_p2, %p235_p0  ;;  %p1471_p6 = por %p242_p4, %p241_p3 }
   0xd   : > { %1681 = sst [smem:[#allocation13_spill]] %s1465_s18  ;;  %p989_p7 = scmp.ge.s32.totalorder %s1367_s12, 1 }
   0xe   : > { %s1682_s19 = scalar_select %p1467_p5, 1, 0 }
   0xf   : > { %s1683_s20 = scalar_select %p1471_p6, 1, 0 }
  0x10   : > { %p249_p8 = scmp.lt.s32.totalorder %s1367_s12, 5  ;;  %p1673_p9 = scmp.eq.s32.totalorder %s1450_s13, 0 }
  0x11   : > { %s1369_s22 = smov [#allocation2]   ;;  %s1370_s25 = smov [#allocation5]  }
  0x12   : > { %p1478_p10 = pnand %p989_p7, %p249_p8  ;;  %s261_s23 = sshll.u32 %s1369_s22, 4  ;;  %s262_s23 = int_to_ptr.vmem [resolvable:$true] %s261_s23 }
  0x13   : > { %s289_s26 = sshll.u32 %s1370_s25, 4  ;;  %s1241_s29 = scalar_lea.hbm %s1664_s1, 2048  ;;  %s1490_s26 = int_to_ptr.vmem [resolvable:$true] %s289_s26 }
  0x14   : > { %s1684_s21 = scalar_select %p1478_p10, 1, 0 }
  0x15   : > { %p1132_p11 = pneg %p1478_p10  ;;  %p1242_p13 = scmp.ne.s32.totalorder %s1664_s1, %s1241_s29 }
  0x16   : > { %p1248_p3 = scmp.lt.u32.totalorder %s1241_s29, %s1664_s1 }
  0x17   : > { %p1486_p12 = pnand %p1673_p9, %p1132_p11 }
  0x19   : > { %p1243_p0 = pneg %p1486_p12 }
  0x1b   : > { %p1244_p1 = pnand %p1243_p0, %p1242_p13 }
  0x1d   : > { %p1245_p2 = pneg %p1244_p1 }
  0x1f   : > { %p1250_p4 = pnand %p1248_p3, %p1245_p2 }
  0x21   : > { %1253 = shalt.err (!%p1250_p4)
}
  0x22   : > { %s1254_s25 = scalar_lea.vmem %s262_s23, 2048  ;;  %p1262_p9 = scmp.lt.s32.totalorder %s262_s23, %s262_s23 }
  0x23   : > { %p1255_p7 = scmp.ne.s32.totalorder %s262_s23, %s1254_s25  ;;  %p1263_p6 = scmp.lt.s32.totalorder %s1254_s25, %s1254_s25 }
  0x25   : > { %p1257_p8 = pnand %p1255_p7, %p1243_p0  ;;  %p1264_p5 = por %p1263_p6, %p1262_p9 }
  0x27   : > { %p1258_p11 = pneg %p1257_p8 }
  0x29   : > { %p1265_p10 = pnand %p1264_p5, %p1258_p11 }
  0x2b   : > { %1268 = shalt.err (!%p1265_p10)
}
  0x2c   : > { %s1371_s27 = smov 64   ;;  %s1372_s28 = smov 4  }
  0x2d   : > { %1135 = dma.hbm_to_vmem [thread:$0]  (!%p1486_p12), %s1664_s1, 2048, %s262_s23, [#allocation3], %s1371_s27, %s1371_s27, %s1372_s28  }
  0x2e   : > { %s1269_s22 = scalar_lea.hbm %s1670_s7, 2048 }
  0x2f   : > { %p1270_p13 = scmp.ne.s32.totalorder %s1670_s7, %s1269_s22  ;;  %p1276_p9 = scmp.lt.u32.totalorder %s1269_s22, %s1670_s7 }
  0x31   : > { %p1272_p5 = pnand %p1270_p13, %p1243_p0 }
  0x33   : > { %p1273_p6 = pneg %p1272_p5 }
  0x35   : > { %p1278_p10 = pnand %p1276_p9, %p1273_p6 }
  0x37   : > { %1281 = shalt.err (!%p1278_p10)
}
  0x38   : > { %s1282_s23 = scalar_lea.vmem %s1490_s26, 2048  ;;  %p1290_p4 = scmp.lt.s32.totalorder %s1490_s26, %s1490_s26 }
  0x39   : > { %p1283_p1 = scmp.ne.s32.totalorder %s1490_s26, %s1282_s23  ;;  %p1291_p7 = scmp.lt.s32.totalorder %s1282_s23, %s1282_s23 }
  0x3b   : > { %p1285_p2 = pnand %p1283_p1, %p1243_p0  ;;  %p1292_p8 = por %p1291_p7, %p1290_p4 }
  0x3d   : > { %p1286_p3 = pneg %p1285_p2 }
  0x3f   : > { %p1293_p11 = pnand %p1292_p8, %p1286_p3 }
  0x41   : > { %1296 = shalt.err (!%p1293_p11)
}
  0x42   : > { %s1373_s11 = smov 128   ;;  %s1374_s15 = smov 8  }
  0x43   : > { %1138 = dma.hbm_to_vmem [thread:$0]  (!%p1486_p12), %s1670_s7, 2048, %s1490_s26, [#allocation6], %s1373_s11, %s1373_s11, %s1374_s15  }
  0x44   : > { %p1686_p13 = scmp.ne.s32.totalorder %s1684_s21, 0 }
  0x45   : > { %p1687_p0 = scmp.eq.s32.totalorder (!%p1686_p13), %s1450_s13, 0 }
  0x46   : > { %316 = sbr.rel (%p1686_p13) target bundleno = 1000 (0x3e8), region = 56 }
  0x4d   : > { %1342 = dma.done.wait (%p1687_p0), [#allocation3], 2048   ;;  %p1688_p5 = pmov %p1687_p0 }
  0x4e   : > { %p1689_p6 = pmov %p1687_p0 }
  0x4f   : > { %1344 = vsyncadd (%p1688_p5), [#allocation3], 4294965248 }
  0x50   : > { %1346 = dma.done.wait (%p1689_p6), [#allocation6], 2048   ;;  %p1690_p9 = pmov %p1687_p0 }
  0x51   : > { %v1375_v0 = vmov 0.0   ;;  %v1189_v1 = vld [vmem:[#allocation2 + $0x40] sm:$0xff]   ;;  %v1191_v3 = vld [vmem:[#allocation2 + $0x48] sm:$0xff]   ;;  %p356_p12 = scmp.lt.s32.totalorder %s1450_s13, 3  ;;  %v1193_v5 = vld [vmem:[#allocation2 + $0x50] sm:$0xff]   ;;  %vm1376_vm0 = vmmov 0  }
  0x52   : > { %1348 = vsyncadd (%p1690_p9), [#allocation6], 4294965248  ;;  %1090 = vmatprep.subr.bf16.mxu1 %v1375_v0  ;;  %v1190_v2 = vld [vmem:[#allocation2] sm:$0xff]   ;;  %1054 = vmatprep.subr.bf16.mxu0 %v1189_v1  ;;  %v1192_v4 = vld [vmem:[#allocation2 + $0x8] sm:$0xff]   ;;  %vm695_vm1 = vcmask 523264   ;;  %s353_s14 = sand.u32 1, %s1359_s10  }
  0x53   : > { %1055 = vmatpush3.bf16.msra.mxu0 %v1190_v2  ;;  %s357_s21 = scalar_select %p356_p12, %s1450_s13, 3  ;;  %v1194_v6 = vld [vmem:[#allocation2 + $0x10] sm:$0xff]   ;;  %v1195_v7 = vld [vmem:[#allocation2 + $0x58] sm:$0xff]   ;;  %v1197_v9 = vld [vmem:[#allocation2 + $0x60] sm:$0xff]   ;;  %1106 = vmatprep.mubr.msk.bf16.mxu1 %vm1376_vm0, %v1375_v0  ;;  %v1377_v2 = vmov 0  }
  0x54   : > { %1056 = vmatprep.subr.bf16.mxu0 %v1191_v3  ;;  %v1196_v8 = vld [vmem:[#allocation2 + $0x18] sm:$0xff]   ;;  %v1198_v10 = vld [vmem:[#allocation2 + $0x20] sm:$0xff]   ;;  %v1199_v11 = vld [vmem:[#allocation2 + $0x68] sm:$0xff]   ;;  %s996_s16 = sshll.u32 %s353_s14, 4  ;;  %s1053_s25 = sshll.u32 %s1450_s13, 8 }
  0x55   : > { %s1052_s24 = sshll.u32 %s357_s21, 4  ;;  %v1205_v14 = vld [vmem:[%s1666_s3] sm:$0xff]   ;;  %v1200_v15 = vld [vmem:[#allocation2 + $0x28] sm:$0xff]   ;;  %v1201_v16 = vld [vmem:[#allocation2 + $0x70] sm:$0xff]   ;;  %s355_s23 = scalar_lea.vmem [#allocation7], %s996_s16 }
  0x56   : > { %s360_s29 = scalar_lea.vmem %s1663_s0, %s1052_s24  ;;  %1091 = vmatpush3.bf16.msra.mxu1 %v1205_v14  ;;  %v1206_v17 = vld [vmem:[%s1666_s3 + $0x8] sm:$0xff]   ;;  %v1202_v18 = vld [vmem:[#allocation2 + $0x30] sm:$0xff]   ;;  %v1203_v19 = vld [vmem:[#allocation2 + $0x78] sm:$0xff]   ;;  %s907_s11 = sshll.u32 %s355_s23, 4  ;;  %s1623_s11 = int_to_ptr.vmem [resolvable:$true] %s907_s11 }
  0x57   : > { %1057 = vmatpush3.bf16.msra.mxu0 %v1192_v4  ;;  %v363_v12 = vld [vmem:[%s360_s29 + $0x8] sm:$0xff]  ;;  %1092 = vmatprep.subr.bf16.mxu1 %v1375_v0  ;;  %v1207_v20 = vld [vmem:[%s1666_s3 + $0x10] sm:$0xff]   ;;  %v1204_v21 = vld [vmem:[#allocation2 + $0x38] sm:$0xff]   ;;  %s1621_s27 = scalar_lea.hbm %s1672_s9, %s1053_s25  ;;  %s893_s13 = scalar_lea.sflag [#allocation4], %s353_s14 }
  0x58   : > { %1058 = vmatprep.subr.bf16.mxu0 %v1193_v5  ;;  %v365_v13 = vpack.c.bf16 %v363_v12, %v363_v12  ;;  %v362_v22 = vld [vmem:[%s360_s29] sm:$0xff]  ;;  %v1208_v23 = vld [vmem:[%s1666_s3 + $0x18] sm:$0xff]   ;;  %v1210_v26 = vld [vmem:[%s1666_s3 + $0x28] sm:$0xff]   ;;  %s1297_s21 = scalar_lea.vmem %s1623_s11, 256  ;;  %p1691_p1 = scmp.ne.s32.totalorder %s1682_s19, 0 }
  0x59   : > { %v364_v24 = vpack.c.bf16 %v362_v22, %v362_v22  ;;  %v1209_v25 = vld [vmem:[%s1666_s3 + $0x20] sm:$0xff]   ;;  %v1211_v27 = vld [vmem:[%s1666_s3 + $0x30] sm:$0xff]   ;;  %v1212_v28 = vld [vmem:[%s1666_s3 + $0x38] sm:$0xff]   ;;  %p1298_p10 = scmp.ne.s32.totalorder %s1623_s11, %s1297_s21  ;;  %s1378_s24 = smov [#allocation7]  }
  0x5a   : > { %533 = vmatprep.mubr.bf16.mxu0 %v365_v13  ;;  %1093 = vmatpush3.bf16.msra.mxu1 %v1206_v17  ;;  %v1213_v29 = vld [vmem:[%s1668_s5] sm:$0xff]   ;;  %v1214_v30 = vld [vmem:[%s1668_s5 + $0x8] sm:$0xff]   ;;  %v1215_v40 = vld [vmem:[%s1668_s5 + $0x10] sm:$0xff]   ;;  %s1301_s26 = sshll.u32 %s1378_s24, 4  ;;  %s1302_s26 = int_to_ptr.vmem [resolvable:$false] %s1301_s26 }
  0x5b   : > { %1059 = vmatpush3.bf16.msra.mxu0 %v1194_v6  ;;  %1094 = vmatprep.subr.bf16.mxu1 %v1375_v0  ;;  %v999_v32 = vld [vmem:[%s1665_s2] ss:$0 sm:$0xff]  ;;  %v1216_v41 = vld [vmem:[%s1668_s5 + $0x18] sm:$0xff]   ;;  %v1219_v43 = vld [vmem:[#allocation5 + $0x4] ss:$8 sps:$4 sm:$0xff]   ;;  %p1299_p2 = pnand %p1298_p10, %p1691_p1  ;;  %s1303_s28 = scalar_lea.vmem %s1302_s26, 512 }
  0x5c   : > { %1060 = vmatprep.subr.bf16.mxu0 %v1195_v7  ;;  %v1217_v42 = vld [vmem:[#allocation5] ss:$8 sps:$4 sm:$0xff]   ;;  %v1222_v44 = vld [vmem:[#allocation5 + $0x14] ss:$8 sps:$4 sm:$0xff]   ;;  %v1220_v45 = vld [vmem:[#allocation5 + $0x10] ss:$8 sps:$4 sm:$0xff]   ;;  %p1304_p4 = scmp.lt.s32.totalorder %s1623_s11, %s1302_s26  ;;  %p1305_p7 = scmp.lt.s32.totalorder %s1303_s28, %s1297_s21 }
  0x5d   : > { %v1225_v46 = vld [vmem:[#allocation5 + $0x24] ss:$8 sps:$4 sm:$0xff]   ;;  %v1223_v47 = vld [vmem:[#allocation5 + $0x20] ss:$8 sps:$4 sm:$0xff]   ;;  %v1228_v48 = vld [vmem:[#allocation5 + $0x34] ss:$8 sps:$4 sm:$0xff]   ;;  %p1300_p3 = pneg %p1299_p2 }
  0x5e   : > { %1095 = vmatpush3.bf16.msra.mxu1 %v1207_v20  ;;  %v1226_v49 = vld [vmem:[#allocation5 + $0x30] ss:$8 sps:$4 sm:$0xff]   ;;  %v1231_v50 = vld [vmem:[#allocation5 + $0x44] ss:$8 sps:$4 sm:$0xff]   ;;  %v1229_v51 = vld [vmem:[#allocation5 + $0x40] ss:$8 sps:$4 sm:$0xff]   ;;  %p1306_p8 = por %p1305_p7, %p1304_p4 }
  0x5f   : > { %1061 = vmatpush3.bf16.msra.mxu0 %v1196_v8  ;;  %1096 = vmatprep.subr.bf16.mxu1 %v1375_v0  ;;  %v1234_v52 = vld [vmem:[#allocation5 + $0x54] ss:$8 sps:$4 sm:$0xff]   ;;  %v1232_v53 = vld [vmem:[#allocation5 + $0x50] ss:$8 sps:$4 sm:$0xff]   ;;  %v1237_v54 = vld [vmem:[#allocation5 + $0x64] ss:$8 sps:$4 sm:$0xff]  }
  0x60   : > { %1062 = vmatprep.subr.bf16.mxu0 %v1197_v9  ;;  %v1235_v55 = vld [vmem:[#allocation5 + $0x60] ss:$8 sps:$4 sm:$0xff]   ;;  %v1238_v1 = vld [vmem:[#allocation5 + $0x70] ss:$8 sps:$4 sm:$0xff]   ;;  %p1307_p11 = pnand %p1306_p8, %p1300_p3 }
  0x61   : > { %v1016_v56 = vld [vmem:[%s1667_s4] ss:$0 sm:$0xff] }
  0x62   : > { %1097 = vmatpush3.bf16.msra.mxu1 %v1208_v23  ;;  %v1025_v3 = vld [vmem:[%s1669_s6] ss:$0 sm:$0xff] }
  0x63   : > { %1063 = vmatpush3.bf16.msra.mxu0 %v1198_v10  ;;  %1098 = vmatprep.subr.bf16.mxu1 %v1375_v0  ;;  %v757_v14 = vld [vmem:[%s1671_s8] sm:$0x3] }
  0x64   : > { %1064 = vmatprep.subr.bf16.mxu0 %v1199_v11  ;;  %v759_v11 = vlaneseq }
  0x66   : > { %1099 = vmatpush3.bf16.msra.mxu1 %v1209_v25  ;;  %v760_v12 = vshrl.u32 %v759_v11, 7 }
  0x67   : > { %1065 = vmatpush3.bf16.msra.mxu0 %v1200_v15  ;;  %1100 = vmatprep.subr.bf16.mxu1 %v1375_v0 }
  0x68   : > { %1066 = vmatprep.subr.bf16.mxu0 %v1201_v16  ;;  %v761_v13 = vsub.s32 0, %v760_v12  ;;  %v765_v15 = vsub.s32 1, %v760_v12 }
  0x6a   : > { %1101 = vmatpush3.bf16.msra.mxu1 %v1210_v26  ;;  %v762_v16 = vrot.slane %v757_v14, %v761_v13  ;;  %v766_v17 = vrot.slane %v757_v14, %v765_v15 }
  0x6b   : > { %1067 = vmatpush3.bf16.msra.mxu0 %v1202_v18  ;;  %1102 = vmatprep.subr.bf16.mxu1 %v1375_v0 }
  0x6c   : > { %1068 = vmatprep.subr.bf16.mxu0 %v1203_v19 }
  0x6e   : > { %1103 = vmatpush3.bf16.msra.mxu1 %v1211_v27 }
  0x6f   : > { %1069 = vmatpush3.bf16.msra.mxu0 %v1204_v21  ;;  %1104 = vmatprep.subr.bf16.mxu1 %v1375_v0 }
  0x70   : > { %1110 = vmatprep.subr.bf16.mxu0 %v1375_v0 }
  0x72   : > { %534 = vmatmul.mubr.bf16.vlgmr.msra.gmra.mrb[0].mxu0 %v364_v24  ;;  %1105 = vmatpush3.bf16.msra.mxu1 %v1212_v28 }
  0x73   : > { %1118 = vmatprep.mubr.msk.bf16.mxu0 %vm1376_vm0, %v1375_v0  ;;  %1111 = vmatpush3.bf16.msra.mxu0 %v1213_v29 }
  0x74   : > { %1112 = vmatprep.subr.bf16.mxu0 %v1375_v0  ;;  %849 = vmatprep.subr.bf16.mxu1 %v1219_v43 }
  0x77   : > { %1113 = vmatpush3.bf16.msra.mxu0 %v1214_v30 }
  0x78   : > { %1114 = vmatprep.subr.bf16.mxu0 %v1375_v0 }
  0x7b   : > { %1115 = vmatpush3.bf16.msra.mxu0 %v1215_v40 }
  0x7c   : > { %1116 = vmatprep.subr.bf16.mxu0 %v1375_v0  ;;  %v1240_v0 = vld [vmem:[#allocation5 + $0x74] ss:$8 sps:$4 sm:$0xff]  }
  0x7f   : > { %1117 = vmatpush3.bf16.msra.mxu0 %v1216_v41 }
 0x145   : > { %v1070_v31 = vpop.f32.mrb[0].mxu0 }
 0x146   : > { %v1071_v33 = vpop.f32.mrb[1].mxu0 }
 0x147   : > { %v1072_v34 = vadd.f32 %v1071_v33, %v1070_v31  ;;  %v1073_v35 = vpop.f32.mrb[2].mxu0 }
 0x148   : > { %v1074_v36 = vpop.f32.mrb[3].mxu0 }
 0x149   : > { %v536_v37 = vadd.f32 %v1072_v34, %v999_v32 }
 0x14b   : > { %v541_v38 = vmax.f32 %v536_v37, 0.0 }
 0x14d   : > { %v542_v39 = vpack.c.bf16 %v541_v38, %v541_v38 }
 0x14f   : > { %1107 = vmatmul.mubr.bf16.vlgmr.msra.gmra.mrb[0].mxu1 %v542_v39 }
 0x150   : > { %850 = vmatpush1.bf16.msra.mxu1 %v1217_v42  ;;  %881 = vmatprep.mubr.bf16.mxu1 %v1377_v2 }
 0x151   : > { %851 = vmatprep.subr.bf16.mxu1 %v1222_v44 }
 0x154   : > { %852 = vmatpush1.bf16.msra.mxu1 %v1220_v45 }
 0x155   : > { %853 = vmatprep.subr.bf16.mxu1 %v1225_v46 }
 0x158   : > { %854 = vmatpush1.bf16.msra.mxu1 %v1223_v47 }
 0x159   : > { %855 = vmatprep.subr.bf16.mxu1 %v1228_v48 }
 0x15c   : > { %856 = vmatpush1.bf16.msra.mxu1 %v1226_v49 }
 0x15d   : > { %857 = vmatprep.subr.bf16.mxu1 %v1231_v50 }
 0x160   : > { %858 = vmatpush1.bf16.msra.mxu1 %v1229_v51 }
 0x161   : > { %859 = vmatprep.subr.bf16.mxu1 %v1234_v52 }
 0x164   : > { %860 = vmatpush1.bf16.msra.mxu1 %v1232_v53 }
 0x165   : > { %861 = vmatprep.subr.bf16.mxu1 %v1237_v54 }
 0x168   : > { %862 = vmatpush1.bf16.msra.mxu1 %v1235_v55 }
 0x169   : > { %863 = vmatprep.subr.bf16.mxu1 %v1240_v0 }
 0x16c   : > { %864 = vmatpush1.bf16.msra.mxu1 %v1238_v1 }
 0x222   : > { %v648_v57 = vpop.f32.mrb[0].mxu1 }
 0x223   : > { %v649_v58 = vadd.f32 %v1016_v56, %v648_v57  ;;  %v1108_v59 = vpop.f32.mrb[1].mxu1 }
 0x224   : > { %v651_v60 = vpop.f32.mrb[2].mxu1 }
 0x225   : > { %v654_v61 = vmax.f32 %v649_v58, 0.0  ;;  %v1109_v62 = vpop.f32.mrb[3].mxu1 }
 0x227   : > { %v655_v63 = vpack.c.bf16 %v654_v61, %v654_v61 }
 0x229   : > { %1119 = vmatmul.mubr.msk.bf16.vlgmr.msra.gmra.mrb[4].mxu0 %vm695_vm1, %v655_v63 }
 0x2fc   : > { %v733_v4 = vpop.f32.mrb[4].mxu0 }
 0x2fd   : > { %v734_v5 = vadd.f32 %v1025_v3, %v733_v4  ;;  %v1120_v6 = vpop.f32.mrb[5].mxu0 }
 0x2fe   : > { %v736_v7 = vpop.f32.mrb[6].mxu0 }
 0x2ff   : > { %v739_v8 = vmax.f32 %v734_v5, 0.0  ;;  %v1121_v9 = vpop.f32.mrb[7].mxu0 }
 0x301   : > { %v740_v10 = vpack.c.bf16 %v739_v8, %v739_v8 }
 0x303   : > { %882 = vmatmul.mubr.bf16.vlgmr.msra.gmra.mrb[4].mxu1 %v740_v10 }
 0x3d6   : > { %v883_v18 = vpop.f32.mrb[4].mxu1 }
 0x3d7   : > { %v884_v19 = vadd.f32 %v883_v18, %v762_v16  ;;  %v885_v20 = vpop.f32.mrb[5].mxu1 }
 0x3d8   : > { %v886_v21 = vadd.f32 %v885_v20, %v766_v17  ;;  %v887_v22 = vpop.f32.mrb[6].mxu1 }
 0x3d9   : > { %890 = vst [vmem:[%s355_s23] sm:$0xff] %v884_v19  ;;  %v888_v23 = vpop.f32.mrb[7].mxu1 }
 0x3da   : > { %891 = vst [vmem:[%s355_s23 + $0x8] sm:$0xff] %v886_v21 }
 0x3db   : > { %1310 = shalt.err (!%p1307_p11)
}
 0x3dc   : > { %s1311_s29 = scalar_lea.hbm %s1621_s27, 256  ;;  %s1315_s17 = scalar_lea.hbm %s1672_s9, 1024 }
 0x3dd   : > { %p1312_p13 = scmp.ne.s32.totalorder %s1621_s27, %s1311_s29  ;;  %p1316_p6 = scmp.lt.u32.totalorder %s1621_s27, %s1672_s9 }
 0x3de   : > { %p1317_p9 = scmp.lt.u32.totalorder %s1315_s17, %s1311_s29  ;;  %p1319_p10 = scmp.lt.u32.totalorder %s1311_s29, %s1621_s27 }
 0x3df   : > { %p1313_p0 = pnand %p1312_p13, %p1691_p1 }
 0x3e0   : > { %p1318_p12 = por %p1317_p9, %p1316_p6 }
 0x3e1   : > { %p1314_p5 = pneg %p1313_p0 }
 0x3e2   : > { %p1320_p2 = por %p1319_p10, %p1318_p12 }
 0x3e4   : > { %p1321_p3 = pnand %p1320_p2, %p1314_p5 }
 0x3e6   : > { %1324 = shalt.err (!%p1321_p3)
}
 0x3e7   : > { %1130 = dma.vmem_to_hbm [thread:$0]  (%p1691_p1), %s1623_s11, 256, %s1621_s27, %s893_s13  }
 0x3e8 PF: > { %p1147_p4 = scmp.ge.s32.totalorder %s1367_s12, 2  ;;  %s919_s23 = sand.u32 1, %s1355_s30  }
 0x3e9   : > { %p1692_p7 = scmp.ne.s32.totalorder %s1683_s20, 0  ;;  %s920_s15 = scalar_lea.sflag [#allocation4], %s919_s23 }
 0x3eb   : > { %p1140_p8 = pnand %p1147_p4, %p1692_p7 }
 0x3ed   : > { %1350 = dma.done.wait (!%p1140_p8), %s920_s15, 256  }
 0x3ee   : > { %1352 = vsyncadd (!%p1140_p8), %s920_s15, 4294967040  ;;  %s1693_s12 = sld [smem:[#allocation12_spill]]  ;;  %s1694_s18 = sld [smem:[#allocation11_spill]] }
 0x3ef   : > { %s1695_s11 = sld [smem:[#allocation13_spill]]  ;;  %s1696_s30 = smov %s1359_s10 }
 0x3f4   : > { %p21_p11 = scmp.ge.s32.totalorder %s1693_s12, 6   ;;  %s1697_s10 = smov %s1694_s18 }
 0x3f6   :  { %23 = sbr.rel (!%p21_p11) target bundleno = 5 (0x5), region = 100 }
 0x3fd   :  { %925 = vsyncpa [#allocation3], 1 }
 0x3fe   :  { %927 = vsyncpa [#allocation3 + $0x1], 1 }
 0x3ff   :  { %928 = vsyncpa [#allocation6], 1 }
 0x400   :  { %929 = vsyncpa [#allocation4], 1 }
 0x401   :  { %931 = vsyncpa [#allocation4 + $0x1], 1 }

</bundles_post_ra>
